<compile_context>
chip_gen: v7x
topology: tpu7x:2x2x1
jax: 0.10.0
libtpu: 0.0.40
codegen_flags: <defaults>
</compile_context>

<pallas_src>
import functools

import jax
import jax.numpy as jnp
from jax import lax
from jax.experimental import pallas as pl
from jax.experimental.pallas import tpu as pltpu


# ---------------- Pallas kernels ----------------

def _conv_stats_kernel(a_ref, w_ref, y_ref, psum_ref, psq_ref, *, m_total, tm):
    """One (TM, K) x (K, Cout_p) MXU tile of the im2col conv (bf16 in, f32 acc).

    Writes the conv result in bf16 and emits per-block partial channel sums /
    sums-of-squares (f32) for training-mode BatchNorm. Rows past the true M
    (partial last tile) are masked out of the statistics.
    """
    y = jnp.dot(a_ref[...], w_ref[...], preferred_element_type=jnp.float32)
    y_ref[...] = y.astype(y_ref.dtype)

    rows_left = m_total - pl.program_id(0) * tm          # valid rows in this block
    row_ids = lax.broadcasted_iota(jnp.int32, y.shape, 0)
    ym = jnp.where(row_ids < rows_left, y, 0.0)
    psum_ref[...] = jnp.sum(ym, axis=0, keepdims=True).reshape(1, 1, -1)
    psq_ref[...] = jnp.sum(ym * ym, axis=0, keepdims=True).reshape(1, 1, -1)


def _bn_relu_kernel(x_ref, scale_ref, shift_ref, o_ref, *, cout):
    """Fused per-channel affine (folded BatchNorm) + ReLU.

    Reads the bf16 conv intermediate, computes in f32, writes the final
    unpadded (TM, Cout) result in the output dtype (bf16 by default).
    """
    y = x_ref[...].astype(jnp.float32) * scale_ref[...] + shift_ref[...]
    o_ref[...] = jnp.maximum(y, 0.0)[:, :cout].astype(o_ref.dtype)


# ---------------- VMEM sizing (generation-aware) ----------------

def _vmem_capacity_bytes():
    try:
        return int(pltpu.get_tpu_info().vmem_capacity_bytes)
    except Exception:
        return 64 * 1024 * 1024          # conservative (v7x-sized) fallback


_VMEM_CAP = _vmem_capacity_bytes()
_VMEM_LIMIT = max(min(_VMEM_CAP - 16 * 1024 * 1024, 100 * 1024 * 1024),
                  32 * 1024 * 1024)      # 48 MiB on v7x (64 MiB parts), 100 MiB on v5e/v6e
_VMEM_BUDGET = (_VMEM_LIMIT * 3) // 4    # what the tiling math may consume
_TM_TARGET = 1024 if _VMEM_CAP > 96 * 1024 * 1024 else 512


def _round_up(x, m):
    return ((x + m - 1) // m) * m


def _pick_tm(m, k, cout_p):
    """Largest TM (multiple of 16) such that the double-buffered A / output blocks, the
    resident weight tile and the in-kernel f32 temporaries fit the VMEM budget. Rows are
    balanced across an (ideally even, for v7x megacore) number of blocks, and no grid
    block may start past the end of the array."""
    k_ceil = _round_up(k, 128)                      # lane padding of the VMEM buffers
    w_bytes = 2 * k_ceil * cout_p * 2               # bf16 weight tile, x2 buffers
    per_row = (2 * k_ceil * 2                       # bf16 A block, x2 buffers
               + 2 * cout_p * 2                     # bf16 conv-out block, x2 buffers
               + 3 * cout_p * 4)                    # in-kernel f32 temps (y, masked y, y*y)
    tm = _TM_TARGET
    while tm > 16 and w_bytes + tm * per_row > _VMEM_BUDGET:
        tm //= 2

    nblk = -(-m // tm)                              # cdiv
    if nblk > 1 and nblk % 2:
        nblk += 1                                   # even split across v7x's 2 TensorCores
    tm = _round_up(-(-m // nblk), 16)               # balance rows, sublane-aligned (bf16)
    while nblk > 1 and (nblk - 1) * tm >= m:        # never launch a fully-OOB block
        nblk -= 1
        tm = _round_up(-(-m // nblk), 16)
    return tm, nblk


# ---------------- forward pass ----------------

@functools.partial(jax.jit,
                   static_argnames=("k", "s", "p", "eps", "out_nchw", "out_dtype"))
def down_samp_block(x, weight, gamma, beta, *, k, s, p, eps=1e-5,
                    out_nchw=False, out_dtype=jnp.bfloat16):
    """Forward of DownSampBlock. x: (N, Cin, H, W) NCHW; weight: (Cout, Cin, k, k).

    Returns NHWC by default (no epilogue transpose pass); out_nchw=True matches the
    PyTorch module's NCHW layout.
    """
    N, Cin, H, W = x.shape
    Cout = weight.shape[0]
    K = Cin * k * k

    # --- im2col (XLA patch extractor, bf16). Feature dim is channel-major then kh, kw,
    #     matching weight.reshape(Cout, Cin*k*k). ---
    x_nhwc = jnp.transpose(x, (0, 2, 3, 1)).astype(jnp.bfloat16)
    patches = lax.conv_general_dilated_patches(
        x_nhwc, filter_shape=(k, k), window_strides=(s, s),
        padding=((p, p), (p, p)),
        dimension_numbers=("NHWC", "HWIO", "NHWC"))       # (N, Hout, Wout, Cin*k*k)
    Hout, Wout = patches.shape[1], patches.shape[2]
    M = N * Hout * Wout
    a = patches.reshape(M, K)                             # bf16, K left unpadded

    # --- lane-dense padding only on the (small) weight / output-channel dim ---
    Cout_p = _round_up(Cout, 128)
    TM, nblk = _pick_tm(M, K, Cout_p)

    w_mat = weight.reshape(Cout, K).T.astype(jnp.bfloat16)          # (K, Cout)
    w_mat = jnp.pad(w_mat, ((0, 0), (0, Cout_p - Cout)))            # (K, Cout_p)

    cparams = pltpu.CompilerParams(
        dimension_semantics=("parallel",), vmem_limit_bytes=_VMEM_LIMIT)

    conv_out, psum, psq = pl.pallas_call(
        functools.partial(_conv_stats_kernel, m_total=M, tm=TM),
        out_shape=(
            jax.ShapeDtypeStruct((M, Cout_p), jnp.bfloat16),        # bf16 intermediate
            jax.ShapeDtypeStruct((nblk, 1, Cout_p), jnp.float32),
            jax.ShapeDtypeStruct((nblk, 1, Cout_p), jnp.float32),
        ),
        grid=(nblk,),
        in_specs=[
            pl.BlockSpec((TM, K), lambda i: (i, 0)),                # K == full dim
            pl.BlockSpec((K, Cout_p), lambda i: (0, 0)),
        ],
        out_specs=(
            pl.BlockSpec((TM, Cout_p), lambda i: (i, 0)),
            pl.BlockSpec((1, 1, Cout_p), lambda i: (i, 0, 0)),
            pl.BlockSpec((1, 1, Cout_p), lambda i: (i, 0, 0)),
        ),
        compiler_params=cparams,
    )(a, w_mat)

    # --- training-mode BatchNorm2d statistics over (N, Hout, Wout). Out-of-range rows
    #     were masked to zero inside the kernel; divide by the true M. ---
    csum = jnp.sum(psum[:, 0, :], axis=0)                 # (Cout_p,)
    csq = jnp.sum(psq[:, 0, :], axis=0)
    mean = csum / M
    # TODO(synk): E[y^2]-E[y]^2 can lose precision when |mean| >> std; switch to a
    # centered second reduction pass if that regime matters.
    var = jnp.maximum(csq / M - mean * mean, 0.0)          # biased variance (BN normalizer)
    inv_std = lax.rsqrt(var + eps)
    gamma_p = jnp.pad(gamma.astype(jnp.float32), (0, Cout_p - Cout))
    beta_p = jnp.pad(beta.astype(jnp.float32), (0, Cout_p - Cout))
    scale = (gamma_p * inv_std).reshape(1, Cout_p)
    shift = (beta_p - mean * gamma_p * inv_std).reshape(1, Cout_p)

    # --- fused BN + ReLU, writing the final unpadded result directly ---
    y_flat = pl.pallas_call(
        functools.partial(_bn_relu_kernel, cout=Cout),
        out_shape=jax.ShapeDtypeStruct((M, Cout), out_dtype),
        grid=(nblk,),
        in_specs=[
            pl.BlockSpec((TM, Cout_p), lambda i: (i, 0)),
            pl.BlockSpec((1, Cout_p), lambda i: (0, 0)),
            pl.BlockSpec((1, Cout_p), lambda i: (0, 0)),
        ],
        out_specs=pl.BlockSpec((TM, Cout), lambda i: (i, 0)),       # Cout == full dim
        compiler_params=cparams,
    )(conv_out, scale, shift)

    y_nhwc = y_flat.reshape(N, Hout, Wout, Cout)
    if out_nchw:
        return jnp.transpose(y_nhwc, (0, 3, 1, 2))
    return y_nhwc


# ---------------- demo / check ----------------

if __name__ == "__main__":
    key = jax.random.PRNGKey(0)
    k1, k2 = jax.random.split(key)

    N, Cin, H, W = 2, 4, 16, 16
    Cout, ksz, stride, pad = 8, 3, 2, 1   # down-sampling: stride 2

    x = jax.random.normal(k1, (N, Cin, H, W), dtype=jnp.float32)
    weight = 0.1 * jax.random.normal(k2, (Cout, Cin, ksz, ksz), dtype=jnp.float32)
    gamma = jnp.ones((Cout,), jnp.float32)   # PyTorch BatchNorm2d default affine params
    beta = jnp.zeros((Cout,), jnp.float32)

    # Fast path (NHWC, bf16) and PyTorch-layout path (NCHW).
    y_nhwc = down_samp_block(x, weight, gamma, beta, k=ksz, s=stride, p=pad)
    y_nhwc = jax.block_until_ready(y_nhwc)
    y_nchw = down_samp_block(x, weight, gamma, beta, k=ksz, s=stride, p=pad,
                             out_nchw=True)
    y_nchw = jax.block_until_ready(y_nchw)

    # pure-JAX reference: conv with bf16 operands + f32 accumulation (matches the MXU
    # path) -> training-mode BN -> ReLU, in NCHW.
    conv_ref = lax.conv_general_dilated(
        x.astype(jnp.bfloat16), weight.astype(jnp.bfloat16),
        window_strides=(stride, stride), padding=((pad, pad), (pad, pad)),
        dimension_numbers=("NCHW", "OIHW", "NCHW"),
        preferred_element_type=jnp.float32)
    mean = conv_ref.mean(axis=(0, 2, 3), keepdims=True)
    var = conv_ref.var(axis=(0, 2, 3), keepdims=True)
    ref = jnp.maximum(
        (conv_ref - mean) * lax.rsqrt(var + 1e-5)
        * gamma.reshape(1, -1, 1, 1) + beta.reshape(1, -1, 1, 1), 0.0)

    Hout, Wout = H // stride, W // stride
    assert y_nchw.shape == ref.shape == (N, Cout, Hout, Wout)
    assert y_nhwc.shape == (N, Hout, Wout, Cout)

    ref_nhwc = jnp.transpose(ref, (0, 2, 3, 1))
    err_nhwc = float(jnp.max(jnp.abs(y_nhwc.astype(jnp.float32) - ref_nhwc)))
    err_nchw = float(jnp.max(jnp.abs(y_nchw.astype(jnp.float32) - ref)))
    # bf16 final write -> ~0.4% relative rounding on O(1) normalized activations.
    assert err_nhwc < 2e-2 and err_nchw < 2e-2, (err_nhwc, err_nchw)
    print("KERNEL_OK")
</pallas_src>

<mosaic_0001>
module attributes {stable_mosaic.version = 11 : i64} {
  func.func @_bn_relu_kernel(%arg0: i32, %arg1: memref<128x128xbf16, #tpu.memory_space<vmem>>, %arg2: memref<1x128xf32, #tpu.memory_space<vmem>>, %arg3: memref<1x128xf32, #tpu.memory_space<vmem>>, %arg4: memref<128x8xbf16, #tpu.memory_space<vmem>>) attributes {dimension_semantics = [#tpu.dimension_semantics<parallel>], iteration_bounds = array<i64: 1>, scalar_prefetch = 0 : i64, scratch_operands = 0 : i64, tpu.core_type = #tpu.core_type<tc>, window_params = [{transform_indices = @transform_0, window_bounds = array<i64: 128, 128>}, {pipeline_mode = #tpu.pipeline_mode<synchronous>, transform_indices = @transform_1, window_bounds = array<i64: 1, 128>}, {pipeline_mode = #tpu.pipeline_mode<synchronous>, transform_indices = @transform_2, window_bounds = array<i64: 1, 128>}, {transform_indices = @transform_3, window_bounds = array<i64: 128, 8>}]} {
    %c0 = arith.constant 0 : index
    %c0_0 = arith.constant 0 : index
    %0 = vector.load %arg1[%c0, %c0_0] : memref<128x128xbf16, #tpu.memory_space<vmem>>, vector<128x128xbf16>
    %1 = arith.extf %0 : vector<128x128xbf16> to vector<128x128xf32>
    %c0_1 = arith.constant 0 : index
    %c0_2 = arith.constant 0 : index
    %2 = vector.load %arg2[%c0_1, %c0_2] : memref<1x128xf32, #tpu.memory_space<vmem>>, vector<1x128xf32>
    %3 = vector.broadcast %2 : vector<1x128xf32> to vector<128x128xf32>
    %4 = arith.mulf %1, %3 : vector<128x128xf32>
    %c0_3 = arith.constant 0 : index
    %c0_4 = arith.constant 0 : index
    %5 = vector.load %arg3[%c0_3, %c0_4] : memref<1x128xf32, #tpu.memory_space<vmem>>, vector<1x128xf32>
    %6 = vector.broadcast %5 : vector<1x128xf32> to vector<128x128xf32>
    %7 = arith.addf %4, %6 : vector<128x128xf32>
    %cst = arith.constant 0.000000e+00 : f32
    %8 = vector.broadcast %cst : f32 to vector<128x128xf32>
    %9 = arith.maximumf %7, %8 : vector<128x128xf32>
    %10 = vector.extract_strided_slice %9 {offsets = [0, 0], sizes = [128, 8], strides = [1, 1]} : vector<128x128xf32> to vector<128x8xf32>
    %11 = arith.truncf %10 : vector<128x8xf32> to vector<128x8xbf16>
    %c0_5 = arith.constant 0 : index
    %c0_6 = arith.constant 0 : index
    %12 = vector.load %arg4[%c0_5, %c0_6] : memref<128x8xbf16, #tpu.memory_space<vmem>>, vector<128x8xbf16>
    tpu.vector_store %arg4[%c0_5, %c0_6], %11 {strides = array<i32>} : memref<128x8xbf16, #tpu.memory_space<vmem>>, vector<128x8xbf16>,
    return
  }
  func.func @transform_0(%arg0: i32) -> (i32, i32) {
    %c0_i32 = arith.constant 0 : i32
    %c0_i32_0 = arith.constant 0 : i32
    return %arg0, %c0_i32 : i32, i32
  }
  func.func @transform_1(%arg0: i32) -> (i32, i32) {
    %c0_i32 = arith.constant 0 : i32
    %c0_i32_0 = arith.constant 0 : i32
    %c0_i32_1 = arith.constant 0 : i32
    return %c0_i32, %c0_i32_0 : i32, i32
  }
  func.func @transform_2(%arg0: i32) -> (i32, i32) {
    %c0_i32 = arith.constant 0 : i32
    %c0_i32_0 = arith.constant 0 : i32
    %c0_i32_1 = arith.constant 0 : i32
    return %c0_i32, %c0_i32_0 : i32, i32
  }
  func.func @transform_3(%arg0: i32) -> (i32, i32) {
    %c0_i32 = arith.constant 0 : i32
    %c0_i32_0 = arith.constant 0 : i32
    return %arg0, %c0_i32 : i32, i32
  }
}

module attributes {stable_mosaic.version = 11 : i64} {
  func.func @_conv_stats_kernel(%arg0: i32, %arg1: memref<128x36xbf16, #tpu.memory_space<vmem>>, %arg2: memref<36x128xbf16, #tpu.memory_space<vmem>>, %arg3: memref<128x128xbf16, #tpu.memory_space<vmem>>, %arg4: memref<1x1x128xf32, #tpu.memory_space<vmem>>, %arg5: memref<1x1x128xf32, #tpu.memory_space<vmem>>) attributes {dimension_semantics = [#tpu.dimension_semantics<parallel>], iteration_bounds = array<i64: 1>, scalar_prefetch = 0 : i64, scratch_operands = 0 : i64, tpu.core_type = #tpu.core_type<tc>, window_params = [{transform_indices = @transform_0, window_bounds = array<i64: 128, 36>}, {pipeline_mode = #tpu.pipeline_mode<synchronous>, transform_indices = @transform_1, window_bounds = array<i64: 36, 128>}, {transform_indices = @transform_2, window_bounds = array<i64: 128, 128>}, {transform_indices = @transform_3, window_bounds = array<i64: 1, 1, 128>}, {transform_indices = @transform_4, window_bounds = array<i64: 1, 1, 128>}]} {
    %c0 = arith.constant 0 : index
    %c0_0 = arith.constant 0 : index
    %0 = vector.load %arg1[%c0, %c0_0] : memref<128x36xbf16, #tpu.memory_space<vmem>>, vector<128x36xbf16>
    %c0_1 = arith.constant 0 : index
    %c0_2 = arith.constant 0 : index
    %1 = vector.load %arg2[%c0_1, %c0_2] : memref<36x128xbf16, #tpu.memory_space<vmem>>, vector<36x128xbf16>
    %cst = arith.constant dense<0.000000e+00> : vector<128x128xf32>
    %2 = tpu.matmul %0, %1, %cst {dimension_numbers = #tpu.dot_dimension_numbers<[1], [0], [0], [1], [0, 0, 1, 1], [], []>} : vector<128x36xbf16>, vector<36x128xbf16>, vector<128x128xf32> -> vector<128x128xf32>
    %3 = arith.truncf %2 : vector<128x128xf32> to vector<128x128xbf16>
    %c0_3 = arith.constant 0 : index
    %c0_4 = arith.constant 0 : index
    %4 = vector.load %arg3[%c0_3, %c0_4] : memref<128x128xbf16, #tpu.memory_space<vmem>>, vector<128x128xbf16>
    tpu.vector_store %arg3[%c0_3, %c0_4], %3 {strides = array<i32>} : memref<128x128xbf16, #tpu.memory_space<vmem>>, vector<128x128xbf16>,
    %c128_i32 = arith.constant 128 : i32
    %5 = arith.muli %arg0, %c128_i32 : i32
    %c128_i32_5 = arith.constant 128 : i32
    %6 = arith.subi %c128_i32_5, %5 : i32
    %7 = tpu.iota {dimensions = array<i32: 0>} : vector<128x128xi32>
    %8 = vector.broadcast %6 : i32 to vector<128x128xi32>
    %9 = arith.cmpi slt, %7, %8 : vector<128x128xi32>
    %cst_6 = arith.constant 0.000000e+00 : f32
    %10 = vector.broadcast %cst_6 : f32 to vector<128x128xf32>
    %11 = arith.select %9, %2, %10 : vector<128x128xi1>, vector<128x128xf32>
    %cst_7 = arith.constant dense<0.000000e+00> : vector<128xf32>
    %12 = vector.multi_reduction <add>, %11, %cst_7 [0] : vector<128x128xf32> to vector<128xf32>
    %13 = vector.shape_cast %12 : vector<128xf32> to vector<1x128xf32>
    %14 = vector.shape_cast %13 : vector<1x128xf32> to vector<1x1x128xf32>
    %c0_8 = arith.constant 0 : index
    %c0_9 = arith.constant 0 : index
    %c0_10 = arith.constant 0 : index
    %15 = vector.load %arg4[%c0_8, %c0_9, %c0_10] : memref<1x1x128xf32, #tpu.memory_space<vmem>>, vector<1x1x128xf32>
    tpu.vector_store %arg4[%c0_8, %c0_9, %c0_10], %14 {strides = array<i32>} : memref<1x1x128xf32, #tpu.memory_space<vmem>>, vector<1x1x128xf32>,
    %16 = arith.mulf %11, %11 : vector<128x128xf32>
    %cst_11 = arith.constant dense<0.000000e+00> : vector<128xf32>
    %17 = vector.multi_reduction <add>, %16, %cst_11 [0] : vector<128x128xf32> to vector<128xf32>
    %18 = vector.shape_cast %17 : vector<128xf32> to vector<1x128xf32>
    %19 = vector.shape_cast %18 : vector<1x128xf32> to vector<1x1x128xf32>
    %c0_12 = arith.constant 0 : index
    %c0_13 = arith.constant 0 : index
    %c0_14 = arith.constant 0 : index
    %20 = vector.load %arg5[%c0_12, %c0_13, %c0_14] : memref<1x1x128xf32, #tpu.memory_space<vmem>>, vector<1x1x128xf32>
    tpu.vector_store %arg5[%c0_12, %c0_13, %c0_14], %19 {strides = array<i32>} : memref<1x1x128xf32, #tpu.memory_space<vmem>>, vector<1x1x128xf32>,
    return
  }
  func.func @transform_0(%arg0: i32) -> (i32, i32) {
    %c0_i32 = arith.constant 0 : i32
    %c0_i32_0 = arith.constant 0 : i32
    return %arg0, %c0_i32 : i32, i32
  }
  func.func @transform_1(%arg0: i32) -> (i32, i32) {
    %c0_i32 = arith.constant 0 : i32
    %c0_i32_0 = arith.constant 0 : i32
    %c0_i32_1 = arith.constant 0 : i32
    return %c0_i32, %c0_i32_0 : i32, i32
  }
  func.func @transform_2(%arg0: i32) -> (i32, i32) {
    %c0_i32 = arith.constant 0 : i32
    %c0_i32_0 = arith.constant 0 : i32
    return %arg0, %c0_i32 : i32, i32
  }
  func.func @transform_3(%arg0: i32) -> (i32, i32, i32) {
    %c0_i32 = arith.constant 0 : i32
    %c0_i32_0 = arith.constant 0 : i32
    %c0_i32_1 = arith.constant 0 : i32
    return %arg0, %c0_i32, %c0_i32_0 : i32, i32, i32
  }
  func.func @transform_4(%arg0: i32) -> (i32, i32, i32) {
    %c0_i32 = arith.constant 0 : i32
    %c0_i32_0 = arith.constant 0 : i32
    %c0_i32_1 = arith.constant 0 : i32
    return %arg0, %c0_i32, %c0_i32_0 : i32, i32, i32
  }
}

</mosaic_0001>

<bundles_post_ra>
// kernel: down_samp_block.3
= control target key start
LH: loop header
LB: loop body
LE: loop exit
PB: predicated region body
PF: predicated region fallthrough
CT: control target
= control target key end

     0   :  { %vm173_vm0 = vcmask 60416   ;;  %s423_s0 = inlined_call_operand.vmem [shape: bf16[128,128], index: 0, kind: input, shape index: {}]   ;;  %s424_s1 = inlined_call_operand.vmem [shape: f32[1,128], index: 1, kind: input, shape index: {}]   ;;  %s425_s2 = inlined_call_operand.vmem [shape: f32[1,128], index: 2, kind: input, shape index: {}]   ;;  %s426_s3 = inlined_call_operand.hbm [shape: bf16[128,8], index: 3, kind: output, shape index: {}]  }
   0x1   :  { %v241_v0 = vld [vmem:[%s423_s0] sm:$0xff]   ;;  %v272_v4 = vld [vmem:[%s423_s0 + $0x8] sm:$0xff]   ;;  %v273_v5 = vld [vmem:[%s423_s0 + $0x10] sm:$0xff]  }
   0x2   :  { %v335_v1 = vld [vmem:[%s424_s1] ss:$0 sm:$0xff]  ;;  %v242_v2 = vunpack.c.l.bf16 %v241_v0  ;;  %v243_v3 = vunpack.c.h.bf16 %v241_v0  ;;  %v274_v6 = vld [vmem:[%s423_s0 + $0x18] sm:$0xff]   ;;  %v246_v8 = vunpack.c.l.bf16 %v272_v4  ;;  %v247_v9 = vunpack.c.h.bf16 %v272_v4 }
   0x3   :  { %v349_v7 = vld [vmem:[%s425_s2] ss:$0 sm:$0xff]  ;;  %v250_v10 = vunpack.c.l.bf16 %v273_v5  ;;  %v251_v11 = vunpack.c.h.bf16 %v273_v5  ;;  %v254_v14 = vunpack.c.l.bf16 %v274_v6  ;;  %v255_v15 = vunpack.c.h.bf16 %v274_v6 }
   0x4   :  { %v54_v12 = vmul.f32 %v242_v2, %v335_v1  ;;  %v55_v13 = vmul.f32 %v243_v3, %v335_v1 }
   0x5   :  { %8 = vsyncpa [#allocation3], 0  ;;  %v56_v16 = vmul.f32 %v246_v8, %v335_v1  ;;  %v57_v17 = vmul.f32 %v247_v9, %v335_v1  ;;  %v58_v18 = vmul.f32 %v250_v10, %v335_v1  ;;  %v59_v19 = vmul.f32 %v251_v11, %v335_v1  ;;  %v275_v36 = vld [vmem:[%s423_s0 + $0x20] sm:$0xff]   ;;  %v276_v41 = vld [vmem:[%s423_s0 + $0x28] sm:$0xff]  }
   0x6   :  { %v77_v20 = vadd.f32 %v349_v7, %v54_v12  ;;  %v78_v21 = vadd.f32 %v349_v7, %v55_v13  ;;  %v60_v22 = vmul.f32 %v254_v14, %v335_v1  ;;  %v61_v23 = vmul.f32 %v255_v15, %v335_v1  ;;  %v277_v42 = vld [vmem:[%s423_s0 + $0x30] sm:$0xff]   ;;  %v278_v47 = vld [vmem:[%s423_s0 + $0x38] sm:$0xff]   ;;  %s306_s0 = smov [#allocation2]  }
   0x7   :  { %v79_v24 = vadd.f32 %v349_v7, %v56_v16  ;;  %v80_v25 = vadd.f32 %v349_v7, %v57_v17  ;;  %v81_v26 = vadd.f32 %v349_v7, %v58_v18  ;;  %v82_v27 = vadd.f32 %v349_v7, %v59_v19  ;;  %s195_s30 = sshll.u32 %s306_s0, 4  ;;  %s196_s30 = int_to_ptr.vmem [resolvable:$true] %s195_s30 }
   0x8   :  { %v93_v28 = vmax.f32 %v77_v20, 0.0  ;;  %v94_v29 = vmax.f32 %v78_v21, 0.0  ;;  %v83_v30 = vadd.f32 %v349_v7, %v60_v22  ;;  %v84_v31 = vadd.f32 %v349_v7, %v61_v23  ;;  %s282_s4 = scalar_lea.vmem %s196_s30, 1024  ;;  %p287_p1 = scmp.lt.s32.totalorder %s196_s30, %s196_s30 }
   0x9   :  { %v95_v32 = vmax.f32 %v79_v24, 0.0  ;;  %v96_v33 = vmax.f32 %v80_v25, 0.0  ;;  %v97_v34 = vmax.f32 %v81_v26, 0.0  ;;  %v98_v35 = vmax.f32 %v82_v27, 0.0  ;;  %p283_p0 = scmp.ne.s32.totalorder %s196_s30, %s282_s4  ;;  %p288_p2 = scmp.lt.s32.totalorder %s282_s4, %s282_s4 }
   0xa   :  { %v224_v37 = vpack.c.bf16 %v93_v28, %v93_v28  ;;  %v225_v38 = vpack.c.bf16 %v94_v29, %v94_v29  ;;  %v99_v39 = vmax.f32 %v83_v30, 0.0  ;;  %v100_v40 = vmax.f32 %v84_v31, 0.0 }
   0xb   :  { %v226_v43 = vpack.c.bf16 %v95_v32, %v95_v32  ;;  %v227_v44 = vpack.c.bf16 %v96_v33, %v96_v33  ;;  %v228_v45 = vpack.c.bf16 %v97_v34, %v97_v34  ;;  %v229_v46 = vpack.c.bf16 %v98_v35, %v98_v35  ;;  %p289_p3 = por %p288_p2, %p287_p1 }
   0xc   :  { %174 = vst.msk [vmem:[#allocation2] sm:$0xf] %vm173_vm0, %v224_v37  ;;  %175 = vst.msk [vmem:[#allocation2 + $0x4] sm:$0xf] %vm173_vm0, %v225_v38  ;;  %v230_v48 = vpack.c.bf16 %v99_v39, %v99_v39  ;;  %v231_v49 = vpack.c.bf16 %v100_v40, %v100_v40  ;;  %v258_v50 = vunpack.c.l.bf16 %v275_v36  ;;  %v259_v51 = vunpack.c.h.bf16 %v275_v36 }
   0xd   :  { %176 = vst.msk [vmem:[#allocation2 + $0x8] sm:$0xf] %vm173_vm0, %v226_v43  ;;  %177 = vst.msk [vmem:[#allocation2 + $0xc] sm:$0xf] %vm173_vm0, %v227_v44  ;;  %v262_v52 = vunpack.c.l.bf16 %v276_v41  ;;  %v263_v53 = vunpack.c.h.bf16 %v276_v41  ;;  %v266_v54 = vunpack.c.l.bf16 %v277_v42  ;;  %v267_v55 = vunpack.c.h.bf16 %v277_v42  ;;  %p290_p4 = pnand %p289_p3, %p283_p0 }
   0xe   :  { %178 = vst.msk [vmem:[#allocation2 + $0x10] sm:$0xf] %vm173_vm0, %v228_v45  ;;  %179 = vst.msk [vmem:[#allocation2 + $0x14] sm:$0xf] %vm173_vm0, %v229_v46  ;;  %v62_v56 = vmul.f32 %v258_v50, %v335_v1  ;;  %v63_v57 = vmul.f32 %v259_v51, %v335_v1  ;;  %v270_v58 = vunpack.c.l.bf16 %v278_v47  ;;  %v271_v59 = vunpack.c.h.bf16 %v278_v47 }
   0xf   :  { %180 = vst.msk [vmem:[#allocation2 + $0x18] sm:$0xf] %vm173_vm0, %v230_v48  ;;  %181 = vst.msk [vmem:[#allocation2 + $0x1c] sm:$0xf] %vm173_vm0, %v231_v49  ;;  %v64_v60 = vmul.f32 %v262_v52, %v335_v1  ;;  %v65_v61 = vmul.f32 %v263_v53, %v335_v1  ;;  %v66_v62 = vmul.f32 %v266_v54, %v335_v1 }
  0x10   :  { %v67_v63 = vmul.f32 %v267_v55, %v335_v1  ;;  %v85_v0 = vadd.f32 %v349_v7, %v62_v56  ;;  %v86_v2 = vadd.f32 %v349_v7, %v63_v57  ;;  %v68_v3 = vmul.f32 %v270_v58, %v335_v1 }
  0x11   :  { %v69_v4 = vmul.f32 %v271_v59, %v335_v1  ;;  %v87_v5 = vadd.f32 %v349_v7, %v64_v60  ;;  %v88_v6 = vadd.f32 %v349_v7, %v65_v61  ;;  %v89_v8 = vadd.f32 %v349_v7, %v66_v62 }
  0x12   :  { %v90_v9 = vadd.f32 %v349_v7, %v67_v63  ;;  %v101_v10 = vmax.f32 %v85_v0, 0.0  ;;  %v102_v11 = vmax.f32 %v86_v2, 0.0  ;;  %v91_v12 = vadd.f32 %v349_v7, %v68_v3 }
  0x13   :  { %v92_v13 = vadd.f32 %v349_v7, %v69_v4  ;;  %v103_v14 = vmax.f32 %v87_v5, 0.0  ;;  %v104_v15 = vmax.f32 %v88_v6, 0.0  ;;  %v105_v16 = vmax.f32 %v89_v8, 0.0 }
  0x14   :  { %v106_v17 = vmax.f32 %v90_v9, 0.0  ;;  %v232_v1 = vpack.c.bf16 %v101_v10, %v101_v10  ;;  %v233_v18 = vpack.c.bf16 %v102_v11, %v102_v11  ;;  %v107_v19 = vmax.f32 %v91_v12, 0.0 }
  0x15   :  { %v108_v20 = vmax.f32 %v92_v13, 0.0  ;;  %v234_v21 = vpack.c.bf16 %v103_v14, %v103_v14  ;;  %v235_v22 = vpack.c.bf16 %v104_v15, %v104_v15  ;;  %v236_v23 = vpack.c.bf16 %v105_v16, %v105_v16 }
  0x16   :  { %v237_v24 = vpack.c.bf16 %v106_v17, %v106_v17  ;;  %182 = vst.msk [vmem:[#allocation2 + $0x20] sm:$0xf] %vm173_vm0, %v232_v1  ;;  %183 = vst.msk [vmem:[#allocation2 + $0x24] sm:$0xf] %vm173_vm0, %v233_v18  ;;  %v238_v25 = vpack.c.bf16 %v107_v19, %v107_v19 }
  0x17   :  { %v239_v7 = vpack.c.bf16 %v108_v20, %v108_v20  ;;  %184 = vst.msk [vmem:[#allocation2 + $0x28] sm:$0xf] %vm173_vm0, %v234_v21  ;;  %185 = vst.msk [vmem:[#allocation2 + $0x2c] sm:$0xf] %vm173_vm0, %v235_v22 }
  0x18   :  { %186 = vst.msk [vmem:[#allocation2 + $0x30] sm:$0xf] %vm173_vm0, %v236_v23  ;;  %187 = vst.msk [vmem:[#allocation2 + $0x34] sm:$0xf] %vm173_vm0, %v237_v24 }
  0x19   :  { %188 = vst.msk [vmem:[#allocation2 + $0x38] sm:$0xf] %vm173_vm0, %v238_v25  ;;  %189 = vst.msk [vmem:[#allocation2 + $0x3c] sm:$0xf] %vm173_vm0, %v239_v7 }
  0x1a   :  { %293 = shalt.err (!%p290_p4)
}
  0x1b   :  { %s294_s7 = scalar_lea.hbm %s426_s3, 1024 }
  0x1c   :  { %p295_p5 = scmp.ne.s32.totalorder %s426_s3, %s294_s7  ;;  %p298_p6 = scmp.lt.u32.totalorder %s294_s7, %s426_s3 }
  0x1e   :  { %p300_p7 = pnand %p298_p6, %p295_p5 }
  0x20   :  { %303 = shalt.err (!%p300_p7)
}
  0x21   :  { %s307_s12 = smov 64   ;;  %s308_s13 = smov 4  }
  0x22   :  { %201 = dma.vmem_to_hbm [thread:$0]  %s196_s30, 1024, %s426_s3, [#allocation3], %s307_s12, %s307_s12, %s308_s13  }
  0x23   :  { %304 = dma.done.wait [#allocation3], 1024  }
  0x24   :  { %305 = vsyncadd [#allocation3], 4294966272 }
  0x25   :  { %205 = vsyncpa [#allocation3], 1 }

// kernel: down_samp_block.2
= control target key start
LH: loop header
LB: loop body
LE: loop exit
PB: predicated region body
PF: predicated region fallthrough
CT: control target
= control target key end

     0   :  { %vm91_vm0 = vcmask 293888   ;;  %vm116_vm1 = vcmask 1041408   ;;  %s667_s1 = inlined_call_operand.vmem [shape: bf16[36,128], index: 1, kind: input, shape index: {}]   ;;  %s668_s0 = inlined_call_operand.vmem [shape: bf16[128,36], index: 0, kind: input, shape index: {}]   ;;  %s669_s2 = inlined_call_operand.vmem [shape: bf16[128,128], index: 2, kind: output, shape index: {0}]   ;;  %s670_s3 = inlined_call_operand.vmem [shape: f32[1,1,128], index: 3, kind: output, shape index: {1}]   ;;  %s671_s4 = inlined_call_operand.vmem [shape: f32[1,1,128], index: 4, kind: output, shape index: {2}]  }
   0x1   :  { %v560_v0 = vld [vmem:[%s667_s1] sm:$0xff]   ;;  %v561_v1 = vld [vmem:[%s667_s1 + $0x8] sm:$0xff]   ;;  %v562_v2 = vld [vmem:[%s667_s1 + $0x10] ss:$0 sps:$4 sm:$0x33]  }
   0x2   :  { %530 = vmatprep.subr.bf16.mxu0 %v560_v0  ;;  %v563_v3 = vld [vmem:[%s668_s0] sm:$0xff]   ;;  %552 = vmatprep.subr.bf16.mxu1 %v560_v0  ;;  %v118_v5 = vsel %vm116_vm1, %v562_v2, 0  ;;  %v564_v6 = vld [vmem:[%s668_s0 + $0x8] sm:$0xff]   ;;  %v565_v8 = vld [vmem:[%s668_s0 + $0x10] sm:$0xff]  }
   0x3   :  { %531 = vmatpush3.bf16.msra.mxu0 %v560_v0  ;;  %555 = vmatpush3.bf16.msra.mxu1 %v560_v0  ;;  %v567_v4 = vld [vmem:[%s668_s0 + $0x20] sm:$0xff]   ;;  %v568_v7 = vld [vmem:[%s668_s0 + $0x28] sm:$0xff]   ;;  %v569_v9 = vld [vmem:[%s668_s0 + $0x30] sm:$0xff]  }
   0x4   :  { %532 = vmatprep.subr.bf16.mxu0 %v561_v1  ;;  %536 = vmatprep.mubr.msk.bf16.mxu0 %vm91_vm0, %v563_v3  ;;  %v566_v10 = vld [vmem:[%s668_s0 + $0x18] sm:$0xff]  }
   0x5   :  { %553 = vmatprep.subr.bf16.mxu1 %v561_v1  ;;  %544 = vmatprep.mubr.msk.bf16.mxu1 %vm91_vm0, %v567_v4  ;;  %v570_v11 = vld [vmem:[%s668_s0 + $0x38] sm:$0xff]  }
   0x7   :  { %533 = vmatpush3.bf16.msra.mxu0 %v561_v1  ;;  %556 = vmatpush3.bf16.msra.mxu1 %v561_v1 }
   0x8   :  { %558 = vmatprep.subr.msk.bf16.mxu0 %vm116_vm1, %v562_v2  ;;  %559 = vmatprep.subr.msk.bf16.mxu1 %vm116_vm1, %v562_v2 }
   0xb   :  { %535 = vmatpush3.bf16.msra.mxu0 %v118_v5  ;;  %557 = vmatpush3.bf16.msra.mxu1 %v118_v5 }
   0xe   :  { %537 = vmatmul.mubr.msk.bf16.vlgmr.msra.gmra.mrb[0].mxu0 %vm91_vm0, %v564_v6  ;;  %545 = vmatmul.mubr.msk.bf16.vlgmr.msra.gmra.mrb[0].mxu1 %vm91_vm0, %v568_v7 }
   0xf   :  { %540 = vmatprep.mubr.msk.bf16.mxu0 %vm91_vm0, %v565_v8  ;;  %548 = vmatprep.mubr.msk.bf16.mxu1 %vm91_vm0, %v569_v9 }
  0x16   :  { %541 = vmatmul.mubr.msk.bf16.gmra.mrb[4].mxu0 %vm91_vm0, %v566_v10  ;;  %549 = vmatmul.mubr.msk.bf16.gmra.mrb[4].mxu1 %vm91_vm0, %v570_v11 }
  0xe1   :  { %v538_v12 = vpop.f32.mrb[0].mxu0  ;;  %v546_v13 = vpop.f32.mrb[0].mxu1 }
  0xe2   :  { %v154_v14 = vpop.f32.mrb[1].mxu0  ;;  %v186_v15 = vpop.f32.mrb[1].mxu1  ;;  %v373_v27 = vmul.f32 %v538_v12, %v538_v12  ;;  %v381_v63 = vmul.f32 %v546_v13, %v546_v13 }
  0xe3   :  { %v539_v16 = vpop.f32.mrb[2].mxu0  ;;  %v547_v17 = vpop.f32.mrb[2].mxu1  ;;  %v371_v18 = vmul.f32 %v154_v14, %v154_v14  ;;  %v379_v57 = vmul.f32 %v186_v15, %v186_v15 }
  0xe4   :  { %v480_v19 = vpack.c.bf16 %v539_v16, %v538_v12  ;;  %v157_v20 = vpop.f32.mrb[3].mxu0  ;;  %v500_v21 = vpack.c.bf16 %v547_v17, %v546_v13  ;;  %v189_v22 = vpop.f32.mrb[3].mxu1  ;;  %v374_v30 = vmul.f32 %v539_v16, %v539_v16  ;;  %v382_v2 = vmul.f32 %v547_v17, %v547_v17 }
  0xe5   :  { %v475_v23 = vpack.c.bf16 %v157_v20, %v154_v14  ;;  %v349_v24 = vadd.f32 %v157_v20, %v154_v14  ;;  %v372_v25 = vmul.f32 %v157_v20, %v157_v20  ;;  %v495_v26 = vpack.c.bf16 %v189_v22, %v186_v15 }
  0xe6   :  { %512 = vst [vmem:[%s669_s2 + $0x8] sm:$0xff] %v480_v19   ;;  %516 = vst [vmem:[%s669_s2 + $0x28] sm:$0xff] %v500_v21   ;;  %v380_v62 = vmul.f32 %v189_v22, %v189_v22 }
  0xe7   :  { %476 = vst [vmem:[%s669_s2] sm:$0xff] %v475_v23   ;;  %v350_v28 = vadd.f32 %v538_v12, %v349_v24  ;;  %v387_v29 = vadd.f32 %v372_v25, %v371_v18  ;;  %515 = vst [vmem:[%s669_s2 + $0x20] sm:$0xff] %v495_v26  }
  0xe9   :  { %v388_v31 = vadd.f32 %v387_v29, %v373_v27  ;;  %v542_v32 = vpop.f32.mrb[4].mxu0  ;;  %v351_v33 = vadd.f32 %v539_v16, %v350_v28  ;;  %v550_v34 = vpop.f32.mrb[4].mxu1 }
  0xea   :  { %v170_v35 = vpop.f32.mrb[5].mxu0  ;;  %v202_v36 = vpop.f32.mrb[5].mxu1  ;;  %v377_v51 = vmul.f32 %v542_v32, %v542_v32  ;;  %v385_v11 = vmul.f32 %v550_v34, %v550_v34 }
  0xeb   :  { %v352_v37 = vadd.f32 %v351_v33, %v170_v35  ;;  %v375_v38 = vmul.f32 %v170_v35, %v170_v35  ;;  %v389_v39 = vadd.f32 %v388_v31, %v374_v30  ;;  %v543_v40 = vpop.f32.mrb[6].mxu0  ;;  %v551_v41 = vpop.f32.mrb[6].mxu1  ;;  %v383_v5 = vmul.f32 %v202_v36, %v202_v36 }
  0xec   :  { %v490_v42 = vpack.c.bf16 %v543_v40, %v542_v32  ;;  %v173_v43 = vpop.f32.mrb[7].mxu0  ;;  %v510_v44 = vpack.c.bf16 %v551_v41, %v550_v34  ;;  %v205_v45 = vpop.f32.mrb[7].mxu1  ;;  %v378_v54 = vmul.f32 %v543_v40, %v543_v40 }
  0xed   :  { %v390_v46 = vadd.f32 %v389_v39, %v375_v38  ;;  %v485_v47 = vpack.c.bf16 %v173_v43, %v170_v35  ;;  %v353_v48 = vadd.f32 %v352_v37, %v173_v43  ;;  %v376_v49 = vmul.f32 %v173_v43, %v173_v43 }
  0xee   :  { %514 = vst [vmem:[%s669_s2 + $0x18] sm:$0xff] %v490_v42   ;;  %518 = vst [vmem:[%s669_s2 + $0x38] sm:$0xff] %v510_v44   ;;  %v505_v50 = vpack.c.bf16 %v205_v45, %v202_v36  ;;  %v384_v10 = vmul.f32 %v205_v45, %v205_v45 }
  0xef   :  { %513 = vst [vmem:[%s669_s2 + $0x10] sm:$0xff] %v485_v47   ;;  %v354_v52 = vadd.f32 %v542_v32, %v353_v48  ;;  %v391_v53 = vadd.f32 %v390_v46, %v376_v49 }
  0xf0   :  { %517 = vst [vmem:[%s669_s2 + $0x30] sm:$0xff] %v505_v50  }
  0xf1   :  { %v392_v55 = vadd.f32 %v391_v53, %v377_v51  ;;  %v355_v56 = vadd.f32 %v543_v40, %v354_v52 }
  0xf3   :  { %v356_v58 = vadd.f32 %v355_v56, %v186_v15  ;;  %v393_v59 = vadd.f32 %v392_v55, %v378_v54  ;;  %v386_v15 = vmul.f32 %v551_v41, %v551_v41 }
  0xf5   :  { %v394_v60 = vadd.f32 %v393_v59, %v379_v57  ;;  %v357_v61 = vadd.f32 %v356_v58, %v189_v22 }
  0xf7   :  { %v358_v0 = vadd.f32 %v546_v13, %v357_v61  ;;  %v395_v1 = vadd.f32 %v394_v60, %v380_v62 }
  0xf9   :  { %v396_v3 = vadd.f32 %v395_v1, %v381_v63  ;;  %v359_v4 = vadd.f32 %v547_v17, %v358_v0 }
  0xfb   :  { %v360_v6 = vadd.f32 %v359_v4, %v202_v36  ;;  %v397_v7 = vadd.f32 %v396_v3, %v382_v2 }
  0xfd   :  { %v398_v8 = vadd.f32 %v397_v7, %v383_v5  ;;  %v361_v9 = vadd.f32 %v360_v6, %v205_v45 }
  0xff   :  { %v362_v12 = vadd.f32 %v550_v34, %v361_v9  ;;  %v399_v14 = vadd.f32 %v398_v8, %v384_v10 }
 0x101   :  { %v363_v16 = vadd.f32 %v551_v41, %v362_v12  ;;  %v400_v18 = vadd.f32 %v399_v14, %v385_v11 }
 0x103   :  { %v364_v19 = vrot.slane %v363_v16, 4  ;;  %v401_v20 = vadd.f32 %v400_v18, %v386_v15 }
 0x105   :  { %v365_v21 = vadd.f32 %v364_v19, %v363_v16  ;;  %v402_v13 = vrot.slane %v401_v20, 4 }
 0x107   :  { %v366_v22 = vrot.slane %v365_v21, 2  ;;  %v403_v23 = vadd.f32 %v402_v13, %v401_v20 }
 0x109   :  { %v367_v24 = vadd.f32 %v366_v22, %v365_v21  ;;  %v404_v17 = vrot.slane %v403_v23, 2 }
 0x10b   :  { %v368_v25 = vrot.slane %v367_v24, 1  ;;  %v405_v26 = vadd.f32 %v404_v17, %v403_v23 }
 0x10d   :  { %v369_v27 = vadd.f32 %v368_v25, %v367_v24  ;;  %v406_v28 = vrot.slane %v405_v26, 1 }
 0x10f   :  { %370 = vst [vmem:[%s670_s3] sm:$0x1] %v369_v27  ;;  %v407_v29 = vadd.f32 %v406_v28, %v405_v26 }
 0x111   :  { %408 = vst [vmem:[%s671_s4] sm:$0x1] %v407_v29 }

</bundles_post_ra>
